<compile_context>
chip_gen: v5e
topology: v5e:2x2
jax: 0.10.0
libtpu: 0.0.40
codegen_flags: <defaults>
</compile_context>

<pallas_src>
import functools

import jax
import jax.numpy as jnp
from jax.experimental import pallas as pl
from jax.experimental.pallas import tpu as pltpu

_FIRST_COL = 1      # scored columns are 1..13 inclusive
_LAST_COL = 14


def _round_up(x, m):
    return ((x + m - 1) // m) * m


def _lg_nrmse_partial_kernel(gt_ref, preds_ref, sq_out_ref, abs_out_ref,
                             sq_acc, abs_acc, *, n_rows, tb, n_steps, ragged):
    """Accumulate per-column sum((preds-gt)^2) and sum(|gt|) over row blocks."""
    split = pl.program_id(0)
    step = pl.program_id(1)
    block_idx = split * n_steps + step

    @pl.when(step == 0)
    def _():
        sq_acc[...] = jnp.zeros_like(sq_acc)
        abs_acc[...] = jnp.zeros_like(abs_acc)

    gt = gt_ref[...]                          # (tb, C) f32
    diff = preds_ref[...] - gt
    abs_gt = jnp.abs(gt)

    def accumulate(d, a):
        sq_acc[...] += jnp.sum(d * d, axis=0, keepdims=True)    # (1, C)
        abs_acc[...] += jnp.sum(a, axis=0, keepdims=True)       # (1, C)

    if not ragged:
        # Batch divides evenly into blocks: always the unmasked fast path.
        accumulate(diff, abs_gt)
    else:
        full_blocks = n_rows // tb            # blocks strictly below are fully valid

        @pl.when(block_idx < full_blocks)
        def _():
            accumulate(diff, abs_gt)

        @pl.when(block_idx >= full_blocks)
        def _():
            valid = n_rows - block_idx * tb   # remaining real rows (may be <= 0)
            row = jax.lax.broadcasted_iota(jnp.int32, diff.shape, 0)
            mask = row < valid
            accumulate(jnp.where(mask, diff, 0.0), jnp.where(mask, abs_gt, 0.0))

    @pl.when(step == n_steps - 1)
    def _():
        sq_out_ref[0] = sq_acc[...]
        abs_out_ref[0] = abs_acc[...]


@functools.partial(jax.jit, static_argnames=("block_rows",))
def lg_nrmse_pallas(gt, preds, *, block_rows=8192):
    """TPU Pallas implementation of the LG_NRMSE score (columns 1..13)."""
    if gt.shape != preds.shape or gt.ndim != 2 or gt.shape[1] < _LAST_COL:
        raise ValueError(f"expected matching 2-D inputs with >= {_LAST_COL} columns")
    n_rows, n_cols = gt.shape
    gt32 = gt.astype(jnp.float32)
    pr32 = preds.astype(jnp.float32)

    # Row tile: multiple of 8 sublanes, no bigger than the (rounded-up) batch.
    tb = int(min(block_rows, _round_up(n_rows, 8)))
    tb = max(8, (tb // 8) * 8)
    blocks = int(pl.cdiv(n_rows, tb))
    if blocks >= 2:
        n_splits = 2                          # megacore split (v7x); harmless on 1-TC chips
        n_steps = int(pl.cdiv(blocks, n_splits))
    else:
        n_splits, n_steps = 1, 1
    coverage = n_splits * n_steps
    ragged = (n_rows % tb != 0) or (coverage != blocks)
    last_block = blocks - 1

    if coverage == blocks:
        in_idx = lambda s, i: (s * n_steps + i, 0)
    else:
        # Clamp the single overhanging grid point onto the last real block so its
        # DMA stays in bounds; its contribution is masked to zero in the kernel.
        in_idx = lambda s, i: (jnp.minimum(s * n_steps + i, last_block), 0)

    in_spec = pl.BlockSpec((tb, n_cols), in_idx)
    out_spec = pl.BlockSpec((1, 1, n_cols), lambda s, i: (s, 0, 0))
    part_shape = jax.ShapeDtypeStruct((n_splits, 1, n_cols), jnp.float32)

    kernel = functools.partial(_lg_nrmse_partial_kernel, n_rows=n_rows, tb=tb,
                               n_steps=n_steps, ragged=ragged)

    sq_part, abs_part = pl.pallas_call(
        kernel,
        out_shape=(part_shape, part_shape),
        grid_spec=pltpu.PrefetchScalarGridSpec(
            num_scalar_prefetch=0,
            grid=(n_splits, n_steps),
            in_specs=[in_spec, in_spec],
            out_specs=[out_spec, out_spec],
            scratch_shapes=[pltpu.VMEM((1, n_cols), jnp.float32),
                            pltpu.VMEM((1, n_cols), jnp.float32)]),
        compiler_params=pltpu.CompilerParams(
            dimension_semantics=("parallel", "arbitrary"),
            vmem_limit_bytes=48 * 1024 * 1024),
    )(gt32, pr32)

    # ---- tiny epilogue on the 13 scored columns (plain JAX) -----------------
    sum_sq = jnp.sum(sq_part, axis=(0, 1))    # (n_cols,)
    sum_abs = jnp.sum(abs_part, axis=(0, 1))
    n = jnp.float32(n_rows)
    rmse = jnp.sqrt(sum_sq[_FIRST_COL:_LAST_COL] / n)      # (13,)
    mean_abs = sum_abs[_FIRST_COL:_LAST_COL] / n
    nrmse = rmse / mean_abs     # NaN/inf on zero-mean columns, matching the reference
    return 1.2 * jnp.sum(nrmse[:8]) + 1.0 * jnp.sum(nrmse[8:])


def _lg_nrmse_ref(gt, preds):
    # Pure-JAX reference mirroring the PyTorch loop.
    vals = []
    for idx in range(1, 14):
        rmse = jnp.sqrt(jnp.mean((preds[:, idx] - gt[:, idx]) ** 2))
        vals.append(rmse / jnp.mean(jnp.abs(gt[:, idx])))
    all_nrmse = jnp.stack(vals)
    return 1.2 * jnp.sum(all_nrmse[:8]) + 1.0 * jnp.sum(all_nrmse[8:])


if __name__ == "__main__":
    key = jax.random.PRNGKey(0)
    k_gt, k_pr = jax.random.split(key)
    N, C = 200, 14  # small batch, 14 target columns (indices 1..13 are scored)
    gt = jax.random.normal(k_gt, (N, C), dtype=jnp.float32) + 2.0
    preds = gt + 0.1 * jax.random.normal(k_pr, (N, C), dtype=jnp.float32)

    ref = _lg_nrmse_ref(gt, preds)

    # Default path: single block covering the whole (small) batch.
    out_single = lg_nrmse_pallas(gt, preds)
    # Tiled path: 5 real blocks on a 2x3 grid -> exercises megacore split,
    # ragged last block, and the clamped overhanging grid point.
    out_tiled = lg_nrmse_pallas(gt, preds, block_rows=48)

    ref, out_single, out_tiled = jax.block_until_ready((ref, out_single, out_tiled))
    assert jnp.allclose(out_single, ref, rtol=1e-5, atol=1e-5), (out_single, ref)
    assert jnp.allclose(out_tiled, ref, rtol=1e-5, atol=1e-5), (out_tiled, ref)
    print("KERNEL_OK")
</pallas_src>

<mosaic_0001>
module attributes {stable_mosaic.version = 11 : i64} {
  func.func @_lg_nrmse_partial_kernel(%arg0: i32, %arg1: i32, %arg2: memref<200x14xf32, #tpu.memory_space<vmem>>, %arg3: memref<200x14xf32, #tpu.memory_space<vmem>>, %arg4: memref<1x1x14xf32, #tpu.memory_space<vmem>>, %arg5: memref<1x1x14xf32, #tpu.memory_space<vmem>>, %arg6: memref<1x14xf32, #tpu.memory_space<vmem>>, %arg7: memref<1x14xf32, #tpu.memory_space<vmem>>) attributes {dimension_semantics = [#tpu.dimension_semantics<parallel>, #tpu.dimension_semantics<arbitrary>], iteration_bounds = array<i64: 1, 1>, scalar_prefetch = 0 : i64, scratch_operands = 2 : i64, tpu.core_type = #tpu.core_type<tc>, window_params = [{transform_indices = @transform_0, window_bounds = array<i64: 200, 14>}, {transform_indices = @transform_1, window_bounds = array<i64: 200, 14>}, {transform_indices = @transform_2, window_bounds = array<i64: 1, 1, 14>}, {transform_indices = @transform_3, window_bounds = array<i64: 1, 1, 14>}]} {
    %c0_i32 = arith.constant 0 : i32
    %0 = arith.cmpi eq, %arg1, %c0_i32 : i32
    %1 = arith.extui %0 : i1 to i32
    %c0_i32_0 = arith.constant 0 : i32
    %2 = arith.cmpi ne, %1, %c0_i32_0 : i32
    scf.if %2 {
      %cst_15 = arith.constant 0.000000e+00 : f32
      %21 = vector.broadcast %cst_15 : f32 to vector<1x14xf32>
      %c0_16 = arith.constant 0 : index
      %c0_17 = arith.constant 0 : index
      %22 = vector.load %arg6[%c0_16, %c0_17] : memref<1x14xf32, #tpu.memory_space<vmem>>, vector<1x14xf32>
      tpu.vector_store %arg6[%c0_16, %c0_17], %21 {strides = array<i32>} : memref<1x14xf32, #tpu.memory_space<vmem>>, vector<1x14xf32>,
      %cst_18 = arith.constant 0.000000e+00 : f32
      %23 = vector.broadcast %cst_18 : f32 to vector<1x14xf32>
      %c0_19 = arith.constant 0 : index
      %c0_20 = arith.constant 0 : index
      %24 = vector.load %arg7[%c0_19, %c0_20] : memref<1x14xf32, #tpu.memory_space<vmem>>, vector<1x14xf32>
      tpu.vector_store %arg7[%c0_19, %c0_20], %23 {strides = array<i32>} : memref<1x14xf32, #tpu.memory_space<vmem>>, vector<1x14xf32>,
    } else {
    }
    %c0 = arith.constant 0 : index
    %c0_1 = arith.constant 0 : index
    %3 = vector.load %arg2[%c0, %c0_1] : memref<200x14xf32, #tpu.memory_space<vmem>>, vector<200x14xf32>
    %c0_2 = arith.constant 0 : index
    %c0_3 = arith.constant 0 : index
    %4 = vector.load %arg3[%c0_2, %c0_3] : memref<200x14xf32, #tpu.memory_space<vmem>>, vector<200x14xf32>
    %5 = arith.subf %4, %3 : vector<200x14xf32>
    %6 = math.absf %3 : vector<200x14xf32>
    %c0_4 = arith.constant 0 : index
    %c0_5 = arith.constant 0 : index
    %7 = vector.load %arg6[%c0_4, %c0_5] : memref<1x14xf32, #tpu.memory_space<vmem>>, vector<1x14xf32>
    %8 = arith.mulf %5, %5 : vector<200x14xf32>
    %cst = arith.constant dense<0.000000e+00> : vector<14xf32>
    %9 = vector.multi_reduction <add>, %8, %cst [0] : vector<200x14xf32> to vector<14xf32>
    %10 = vector.shape_cast %9 : vector<14xf32> to vector<1x14xf32>
    %11 = arith.addf %7, %10 : vector<1x14xf32>
    %c0_6 = arith.constant 0 : index
    %c0_7 = arith.constant 0 : index
    %12 = vector.load %arg6[%c0_6, %c0_7] : memref<1x14xf32, #tpu.memory_space<vmem>>, vector<1x14xf32>
    tpu.vector_store %arg6[%c0_6, %c0_7], %11 {strides = array<i32>} : memref<1x14xf32, #tpu.memory_space<vmem>>, vector<1x14xf32>,
    %c0_8 = arith.constant 0 : index
    %c0_9 = arith.constant 0 : index
    %13 = vector.load %arg7[%c0_8, %c0_9] : memref<1x14xf32, #tpu.memory_space<vmem>>, vector<1x14xf32>
    %cst_10 = arith.constant dense<0.000000e+00> : vector<14xf32>
    %14 = vector.multi_reduction <add>, %6, %cst_10 [0] : vector<200x14xf32> to vector<14xf32>
    %15 = vector.shape_cast %14 : vector<14xf32> to vector<1x14xf32>
    %16 = arith.addf %13, %15 : vector<1x14xf32>
    %c0_11 = arith.constant 0 : index
    %c0_12 = arith.constant 0 : index
    %17 = vector.load %arg7[%c0_11, %c0_12] : memref<1x14xf32, #tpu.memory_space<vmem>>, vector<1x14xf32>
    tpu.vector_store %arg7[%c0_11, %c0_12], %16 {strides = array<i32>} : memref<1x14xf32, #tpu.memory_space<vmem>>, vector<1x14xf32>,
    %c0_i32_13 = arith.constant 0 : i32
    %18 = arith.cmpi eq, %arg1, %c0_i32_13 : i32
    %19 = arith.extui %18 : i1 to i32
    %c0_i32_14 = arith.constant 0 : i32
    %20 = arith.cmpi ne, %19, %c0_i32_14 : i32
    scf.if %20 {
      %c0_15 = arith.constant 0 : index
      %c0_16 = arith.constant 0 : index
      %21 = vector.load %arg6[%c0_15, %c0_16] : memref<1x14xf32, #tpu.memory_space<vmem>>, vector<1x14xf32>
      %c0_17 = arith.constant 0 : index
      %c0_18 = arith.constant 0 : index
      %c0_19 = arith.constant 0 : index
      %22 = vector.load %arg4[%c0_17, %c0_18, %c0_19] : memref<1x1x14xf32, #tpu.memory_space<vmem>>, vector<1x1x14xf32>
      %23 = vector.shape_cast %22 : vector<1x1x14xf32> to vector<1x14xf32>
      %24 = vector.shape_cast %21 : vector<1x14xf32> to vector<1x1x14xf32>
      tpu.vector_store %arg4[%c0_17, %c0_18, %c0_19], %24 {strides = array<i32>} : memref<1x1x14xf32, #tpu.memory_space<vmem>>, vector<1x1x14xf32>,
      %c0_20 = arith.constant 0 : index
      %c0_21 = arith.constant 0 : index
      %25 = vector.load %arg7[%c0_20, %c0_21] : memref<1x14xf32, #tpu.memory_space<vmem>>, vector<1x14xf32>
      %c0_22 = arith.constant 0 : index
      %c0_23 = arith.constant 0 : index
      %c0_24 = arith.constant 0 : index
      %26 = vector.load %arg5[%c0_22, %c0_23, %c0_24] : memref<1x1x14xf32, #tpu.memory_space<vmem>>, vector<1x1x14xf32>
      %27 = vector.shape_cast %26 : vector<1x1x14xf32> to vector<1x14xf32>
      %28 = vector.shape_cast %25 : vector<1x14xf32> to vector<1x1x14xf32>
      tpu.vector_store %arg5[%c0_22, %c0_23, %c0_24], %28 {strides = array<i32>} : memref<1x1x14xf32, #tpu.memory_space<vmem>>, vector<1x1x14xf32>,
    } else {
    }
    return
  }
  func.func @transform_0(%arg0: i32, %arg1: i32) -> (i32, i32) {
    %c1_i32 = arith.constant 1 : i32
    %0 = arith.muli %arg0, %c1_i32 : i32
    %1 = arith.addi %0, %arg1 : i32
    %c0_i32 = arith.constant 0 : i32
    %c0_i32_0 = arith.constant 0 : i32
    return %1, %c0_i32 : i32, i32
  }
  func.func @transform_1(%arg0: i32, %arg1: i32) -> (i32, i32) {
    %c1_i32 = arith.constant 1 : i32
    %0 = arith.muli %arg0, %c1_i32 : i32
    %1 = arith.addi %0, %arg1 : i32
    %c0_i32 = arith.constant 0 : i32
    %c0_i32_0 = arith.constant 0 : i32
    return %1, %c0_i32 : i32, i32
  }
  func.func @transform_2(%arg0: i32, %arg1: i32) -> (i32, i32, i32) {
    %c0_i32 = arith.constant 0 : i32
    %c0_i32_0 = arith.constant 0 : i32
    %c0_i32_1 = arith.constant 0 : i32
    return %arg0, %c0_i32, %c0_i32_0 : i32, i32, i32
  }
  func.func @transform_3(%arg0: i32, %arg1: i32) -> (i32, i32, i32) {
    %c0_i32 = arith.constant 0 : i32
    %c0_i32_0 = arith.constant 0 : i32
    %c0_i32_1 = arith.constant 0 : i32
    return %arg0, %c0_i32, %c0_i32_0 : i32, i32, i32
  }
}

</mosaic_0001>

<bundles_post_ra>
// kernel: lg_nrmse_pallas.1
= control target key start
LH: loop header
LB: loop body
LE: loop exit
PB: predicated region body
PF: predicated region fallthrough
CT: control target
= control target key end

     0   :  { %vm61_vm0 = vcmask 106496   ;;  %v335_v0 = vmov 0.0   ;;  %vm190_vm1 = vcmask 113664   ;;  %s616_s0 = inlined_call_operand.vmem [shape: f32[200,14], index: 0, kind: input, shape index: {}]   ;;  %s617_s1 = inlined_call_operand.vmem [shape: f32[200,14], index: 1, kind: input, shape index: {}]   ;;  %s618_s2 = inlined_call_operand.vmem [shape: f32[1,1,14], index: 2, kind: output, shape index: {0}]   ;;  %s619_s3 = inlined_call_operand.vmem [shape: f32[1,1,14], index: 3, kind: output, shape index: {1}]  }
   0x1   :  { %62 = vst.msk [vmem:[#allocation2] sm:$0x1] %vm61_vm0, %v335_v0  ;;  %v64_v1 = vld [vmem:[%s616_s0] sm:$0xff]  ;;  %v65_v2 = vld [vmem:[%s616_s0 + $0x8] sm:$0xff]  ;;  %v66_v3 = vld [vmem:[%s616_s0 + $0x10] sm:$0xff] }
   0x2   :  { %63 = vst.msk [vmem:[#allocation3] sm:$0x1] %vm61_vm0, %v335_v0  ;;  %v89_v4 = vld [vmem:[%s617_s1] sm:$0xff]  ;;  %v90_v5 = vld [vmem:[%s617_s1 + $0x8] sm:$0xff]  ;;  %v91_v6 = vld [vmem:[%s617_s1 + $0x10] sm:$0xff] }
   0x3   :  { %v67_v7 = vld [vmem:[%s616_s0 + $0x18] sm:$0xff]  ;;  %v139_v9 = vand.u32 2147483647, %v64_v1  ;;  %v140_v10 = vand.u32 2147483647, %v65_v2  ;;  %v114_v11 = vsub.f32 %v89_v4, %v64_v1  ;;  %v115_v12 = vsub.f32 %v90_v5, %v65_v2  ;;  %v68_v14 = vld [vmem:[%s616_s0 + $0x20] sm:$0xff] }
   0x4   :  { %v92_v8 = vld [vmem:[%s617_s1 + $0x18] sm:$0xff]  ;;  %v116_v13 = vsub.f32 %v91_v6, %v66_v3  ;;  %v93_v15 = vld [vmem:[%s617_s1 + $0x20] sm:$0xff]  ;;  %v69_v17 = vld [vmem:[%s616_s0 + $0x28] sm:$0xff]  ;;  %v141_v19 = vand.u32 2147483647, %v66_v3 }
   0x5   :  { %v117_v16 = vsub.f32 %v92_v8, %v67_v7  ;;  %v94_v18 = vld [vmem:[%s617_s1 + $0x28] sm:$0xff]  ;;  %v250_v20 = vsel %vm190_vm1, %v139_v9, 0.0  ;;  %v251_v21 = vsel %vm190_vm1, %v140_v10, 0.0  ;;  %v399_v22 = vld [vmem:[%s616_s0 + $0x30] sm:$0xff]  ;;  %v118_v24 = vsub.f32 %v93_v15, %v68_v14  ;;  %v71_v31 = vld [vmem:[%s616_s0 + $0x38] sm:$0xff] }
   0x6   :  { %v95_v23 = vld [vmem:[%s617_s1 + $0x30] sm:$0xff]  ;;  %v165_v25 = vmul.f32 %v114_v11, %v114_v11  ;;  %v166_v26 = vmul.f32 %v115_v12, %v115_v12  ;;  %v167_v27 = vmul.f32 %v116_v13, %v116_v13  ;;  %v119_v28 = vsub.f32 %v94_v18, %v69_v17  ;;  %v96_v32 = vld [vmem:[%s617_s1 + $0x38] sm:$0xff]  ;;  %v72_v40 = vld [vmem:[%s616_s0 + $0x40] sm:$0xff] }
   0x7   :  { %v168_v29 = vmul.f32 %v117_v16, %v117_v16  ;;  %v252_v30 = vadd.f32 %v251_v21, %v250_v20  ;;  %v120_v33 = vsub.f32 %v95_v23, %v399_v22  ;;  %v142_v34 = vand.u32 2147483647, %v67_v7  ;;  %v97_v41 = vld [vmem:[%s617_s1 + $0x40] sm:$0xff]  ;;  %v425_v48 = vld [vmem:[%s616_s0 + $0x48] sm:$0xff]  ;;  %v434_v53 = vld [vmem:[%s616_s0 + $0x50] sm:$0xff] }
   0x8   :  { %v253_v35 = vsel %vm190_vm1, %v141_v19, 0.0  ;;  %v169_v36 = vmul.f32 %v118_v24, %v118_v24  ;;  %v191_v37 = vsel %vm190_vm1, %v165_v25, 0.0  ;;  %v192_v38 = vsel %vm190_vm1, %v166_v26, 0.0  ;;  %v98_v49 = vld [vmem:[%s617_s1 + $0x48] sm:$0xff]  ;;  %v99_v54 = vld [vmem:[%s617_s1 + $0x50] sm:$0xff]  ;;  %v446_v0 = vld [vmem:[%s616_s0 + $0x58] sm:$0xff] }
   0x9   :  { %v194_v39 = vsel %vm190_vm1, %v167_v27, 0.0  ;;  %v193_v42 = vadd.f32 %v192_v38, %v191_v37  ;;  %v143_v43 = vand.u32 2147483647, %v68_v14  ;;  %v121_v44 = vsub.f32 %v96_v32, %v71_v31  ;;  %v100_v1 = vld [vmem:[%s617_s1 + $0x58] sm:$0xff]  ;;  %v457_v6 = vld [vmem:[%s616_s0 + $0x60] sm:$0xff]  ;;  %v466_v14 = vld [vmem:[%s616_s0 + $0x68] sm:$0xff] }
   0xa   :  { %v170_v45 = vmul.f32 %v119_v28, %v119_v28  ;;  %v196_v46 = vsel %vm190_vm1, %v168_v29, 0.0  ;;  %v254_v47 = vadd.f32 %v253_v35, %v252_v30  ;;  %v144_v51 = vand.u32 2147483647, %v69_v17  ;;  %v101_v7 = vld [vmem:[%s617_s1 + $0x60] sm:$0xff]  ;;  %v102_v15 = vld [vmem:[%s617_s1 + $0x68] sm:$0xff]  ;;  %v476_v20 = vld [vmem:[%s616_s0 + $0x70] sm:$0xff] }
   0xb   :  { %v195_v50 = vadd.f32 %v194_v39, %v193_v42  ;;  %v255_v52 = vsel %vm190_vm1, %v142_v34, 0.0  ;;  %v122_v55 = vsub.f32 %v97_v41, %v72_v40  ;;  %v171_v56 = vmul.f32 %v120_v33, %v120_v33  ;;  %v103_v24 = vld [vmem:[%s617_s1 + $0x70] sm:$0xff]  ;;  %v490_v32 = vld [vmem:[%s616_s0 + $0x78] sm:$0xff]  ;;  %v502_v41 = vld [vmem:[%s616_s0 + $0x80] sm:$0xff] }
   0xc   :  { %v198_v57 = vsel %vm190_vm1, %v169_v36, 0.0  ;;  %v257_v59 = vsel %vm190_vm1, %v143_v43, 0.0  ;;  %v123_v60 = vsub.f32 %v98_v49, %v425_v48  ;;  %v172_v61 = vmul.f32 %v121_v44, %v121_v44  ;;  %v104_v33 = vld [vmem:[%s617_s1 + $0x78] sm:$0xff]  ;;  %v105_v42 = vld [vmem:[%s617_s1 + $0x80] sm:$0xff] }
   0xd   :  { %v197_v58 = vadd.f32 %v196_v46, %v195_v50  ;;  %v200_v62 = vsel %vm190_vm1, %v170_v45, 0.0  ;;  %v256_v63 = vadd.f32 %v255_v52, %v254_v47  ;;  %v124_v2 = vsub.f32 %v99_v54, %v434_v53  ;;  %v514_v50 = vld [vmem:[%s616_s0 + $0x88] sm:$0xff] }
   0xe   :  { %v145_v4 = vand.u32 2147483647, %v399_v22  ;;  %v259_v5 = vsel %vm190_vm1, %v144_v51, 0.0  ;;  %v173_v8 = vmul.f32 %v122_v55, %v122_v55  ;;  %v202_v9 = vsel %vm190_vm1, %v171_v56, 0.0  ;;  %v106_v51 = vld [vmem:[%s617_s1 + $0x88] sm:$0xff] }
   0xf   :  { %v199_v3 = vadd.f32 %v198_v57, %v197_v58  ;;  %v146_v10 = vand.u32 2147483647, %v71_v31  ;;  %v258_v11 = vadd.f32 %v257_v59, %v256_v63  ;;  %v147_v13 = vand.u32 2147483647, %v72_v40  ;;  %v526_v59 = vld [vmem:[%s616_s0 + $0x90] sm:$0xff] }
  0x10   :  { %v125_v16 = vsub.f32 %v100_v1, %v446_v0  ;;  %v174_v17 = vmul.f32 %v123_v60, %v123_v60  ;;  %v204_v18 = vsel %vm190_vm1, %v172_v61, 0.0  ;;  %v126_v21 = vsub.f32 %v101_v7, %v457_v6  ;;  %v107_v60 = vld [vmem:[%s617_s1 + $0x90] sm:$0xff] }
  0x11   :  { %v201_v12 = vadd.f32 %v200_v62, %v199_v3  ;;  %v260_v19 = vadd.f32 %v259_v5, %v258_v11  ;;  %v175_v22 = vmul.f32 %v124_v2, %v124_v2  ;;  %v206_v25 = vsel %vm190_vm1, %v173_v8, 0.0  ;;  %v108_v5 = vld [vmem:[%s617_s1 + $0x98] sm:$0xff] }
  0x12   :  { %v148_v26 = vand.u32 2147483647, %v425_v48  ;;  %v261_v27 = vsel %vm190_vm1, %v145_v4, 0.0  ;;  %v263_v28 = vsel %vm190_vm1, %v146_v10, 0.0  ;;  %v127_v29 = vsub.f32 %v102_v15, %v466_v14  ;;  %v538_v4 = vld [vmem:[%s616_s0 + $0x98] sm:$0xff] }
  0x13   :  { %v203_v23 = vadd.f32 %v202_v9, %v201_v12  ;;  %v262_v31 = vadd.f32 %v261_v27, %v260_v19  ;;  %v176_v34 = vmul.f32 %v125_v16, %v125_v16  ;;  %v208_v35 = vsel %vm190_vm1, %v174_v17, 0.0 }
  0x14   :  { %v149_v36 = vand.u32 2147483647, %v434_v53  ;;  %v265_v37 = vsel %vm190_vm1, %v147_v13, 0.0  ;;  %v128_v38 = vsub.f32 %v103_v24, %v476_v20  ;;  %v177_v43 = vmul.f32 %v126_v21, %v126_v21  ;;  %v84_v13 = vld [vmem:[%s616_s0 + $0xa0] sm:$0xff] }
  0x15   :  { %v205_v30 = vadd.f32 %v204_v18, %v203_v23  ;;  %v264_v40 = vadd.f32 %v263_v28, %v262_v31  ;;  %v210_v44 = vsel %vm190_vm1, %v175_v22, 0.0  ;;  %v150_v45 = vand.u32 2147483647, %v446_v0  ;;  %v85_v22 = vld [vmem:[%s616_s0 + $0xa8] sm:$0xff]  ;;  %v86_v31 = vld [vmem:[%s616_s0 + $0xb0] sm:$0xff] }
  0x16   :  { %v267_v46 = vsel %vm190_vm1, %v148_v26, 0.0  ;;  %v129_v47 = vsub.f32 %v104_v33, %v490_v32  ;;  %v178_v52 = vmul.f32 %v127_v29, %v127_v29  ;;  %v212_v53 = vsel %vm190_vm1, %v176_v34, 0.0  ;;  %v110_v23 = vld [vmem:[%s617_s1 + $0xa8] sm:$0xff] }
  0x17   :  { %v207_v39 = vadd.f32 %v206_v25, %v205_v30  ;;  %v266_v49 = vadd.f32 %v265_v37, %v264_v40  ;;  %v151_v54 = vand.u32 2147483647, %v457_v6  ;;  %v269_v55 = vsel %vm190_vm1, %v149_v36, 0.0  ;;  %v87_v40 = vld [vmem:[%s616_s0 + $0xb8] sm:$0xff] }
  0x18   :  { %v130_v56 = vsub.f32 %v105_v42, %v502_v41  ;;  %v179_v61 = vmul.f32 %v128_v38, %v128_v38  ;;  %v214_v62 = vsel %vm190_vm1, %v177_v43, 0.0  ;;  %v152_v63 = vand.u32 2147483647, %v466_v14  ;;  %v109_v14 = vld [vmem:[%s617_s1 + $0xa0] sm:$0xff] }
  0x19   :  { %v209_v48 = vadd.f32 %v208_v35, %v207_v39  ;;  %v268_v58 = vadd.f32 %v267_v46, %v266_v49  ;;  %v271_v0 = vsel %vm190_vm1, %v150_v45, 0.0  ;;  %v131_v1 = vsub.f32 %v106_v51, %v514_v50  ;;  %v88_v49 = vld [vmem:[%s616_s0 + $0xc0] sm:$0xff] }
  0x1a   :  { %v180_v6 = vmul.f32 %v129_v47, %v129_v47  ;;  %v216_v7 = vsel %vm190_vm1, %v178_v52, 0.0  ;;  %v153_v8 = vand.u32 2147483647, %v476_v20  ;;  %v273_v9 = vsel %vm190_vm1, %v151_v54, 0.0 }
  0x1b   :  { %v211_v57 = vadd.f32 %v210_v44, %v209_v48  ;;  %v270_v3 = vadd.f32 %v269_v55, %v268_v58  ;;  %v132_v10 = vsub.f32 %v107_v60, %v526_v59  ;;  %v181_v15 = vmul.f32 %v130_v56, %v130_v56 }
  0x1c   :  { %v218_v16 = vsel %vm190_vm1, %v179_v61, 0.0  ;;  %v154_v17 = vand.u32 2147483647, %v490_v32  ;;  %v275_v18 = vsel %vm190_vm1, %v152_v63, 0.0  ;;  %v133_v19 = vsub.f32 %v108_v5, %v538_v4  ;;  %v111_v32 = vld [vmem:[%s617_s1 + $0xb0] sm:$0xff] }
  0x1d   :  { %v213_v2 = vadd.f32 %v212_v53, %v211_v57  ;;  %v272_v12 = vadd.f32 %v271_v0, %v270_v3  ;;  %v182_v24 = vmul.f32 %v131_v1, %v131_v1  ;;  %v220_v25 = vsel %vm190_vm1, %v180_v6, 0.0 }
  0x1e   :  { %v155_v26 = vand.u32 2147483647, %v502_v41  ;;  %v277_v27 = vsel %vm190_vm1, %v153_v8, 0.0  ;;  %v134_v28 = vsub.f32 %v109_v14, %v84_v13  ;;  %v183_v33 = vmul.f32 %v132_v10, %v132_v10  ;;  %v112_v41 = vld [vmem:[%s617_s1 + $0xb8] sm:$0xff] }
  0x1f   :  { %v215_v11 = vadd.f32 %v214_v62, %v213_v2  ;;  %v274_v21 = vadd.f32 %v273_v9, %v272_v12  ;;  %v222_v34 = vsel %vm190_vm1, %v181_v15, 0.0  ;;  %v156_v35 = vand.u32 2147483647, %v514_v50  ;;  %v113_v50 = vld [vmem:[%s617_s1 + $0xc0] sm:$0xff] }
  0x20   :  { %v279_v36 = vsel %vm190_vm1, %v154_v17, 0.0  ;;  %v135_v37 = vsub.f32 %v110_v23, %v85_v22  ;;  %v184_v42 = vmul.f32 %v133_v19, %v133_v19  ;;  %v224_v43 = vsel %vm190_vm1, %v182_v24, 0.0 }
  0x21   :  { %v217_v20 = vadd.f32 %v216_v7, %v215_v11  ;;  %v276_v30 = vadd.f32 %v275_v18, %v274_v21  ;;  %v157_v44 = vand.u32 2147483647, %v526_v59  ;;  %v281_v45 = vsel %vm190_vm1, %v155_v26, 0.0 }
  0x22   :  { %v136_v46 = vsub.f32 %v111_v32, %v86_v31  ;;  %v185_v51 = vmul.f32 %v134_v28, %v134_v28  ;;  %v226_v52 = vsel %vm190_vm1, %v183_v33, 0.0  ;;  %v158_v53 = vand.u32 2147483647, %v538_v4 }
  0x23   :  { %v219_v29 = vadd.f32 %v218_v16, %v217_v20  ;;  %v278_v39 = vadd.f32 %v277_v27, %v276_v30  ;;  %v283_v54 = vsel %vm190_vm1, %v156_v35, 0.0  ;;  %v137_v55 = vsub.f32 %v112_v41, %v87_v40  ;;  %v164_v41 = vld [vmem:[#allocation2] sm:$0x1] }
  0x24   :  { %v186_v58 = vmul.f32 %v135_v37, %v135_v37  ;;  %v228_v59 = vsel %vm190_vm1, %v184_v42, 0.0  ;;  %v159_v60 = vand.u32 2147483647, %v84_v13  ;;  %v285_v61 = vsel %vm190_vm1, %v157_v44, 0.0  ;;  %v249_v44 = vld [vmem:[#allocation3] sm:$0x1] }
  0x25   :  { %v221_v38 = vadd.f32 %v220_v25, %v219_v29  ;;  %v280_v48 = vadd.f32 %v279_v36, %v278_v39  ;;  %v138_v62 = vsub.f32 %v113_v50, %v88_v49  ;;  %v187_v1 = vmul.f32 %v136_v46, %v136_v46 }
  0x26   :  { %v230_v2 = vsel %vm190_vm1, %v185_v51, 0.0  ;;  %v160_v3 = vand.u32 2147483647, %v85_v22  ;;  %v287_v4 = vsel %vm190_vm1, %v158_v53, 0.0  ;;  %v188_v7 = vmul.f32 %v137_v55, %v137_v55 }
  0x27   :  { %v223_v47 = vadd.f32 %v222_v34, %v221_v38  ;;  %v282_v57 = vadd.f32 %v281_v45, %v280_v48  ;;  %v232_v8 = vsel %vm190_vm1, %v186_v58, 0.0  ;;  %v161_v9 = vand.u32 2147483647, %v86_v31 }
  0x28   :  { %v289_v10 = vsel %vm190_vm1, %v159_v60, 0.0  ;;  %v189_v13 = vmul.f32 %v138_v62, %v138_v62  ;;  %v234_v14 = vsel %vm190_vm1, %v187_v1, 0.0  ;;  %v162_v15 = vand.u32 2147483647, %v87_v40 }
  0x29   :  { %v225_v56 = vadd.f32 %v224_v43, %v223_v47  ;;  %v284_v0 = vadd.f32 %v283_v54, %v282_v57  ;;  %v291_v16 = vsel %vm190_vm1, %v160_v3, 0.0  ;;  %v236_v19 = vsel %vm190_vm1, %v188_v7, 0.0 }
  0x2a   :  { %v163_v20 = vand.u32 2147483647, %v88_v49  ;;  %v293_v21 = vsel %vm190_vm1, %v161_v9, 0.0  ;;  %v238_v24 = vsel %vm190_vm1, %v189_v13, 0.0  ;;  %v295_v25 = vsel %vm190_vm1, %v162_v15, 0.0 }
  0x2b   :  { %v227_v63 = vadd.f32 %v226_v52, %v225_v56  ;;  %v286_v6 = vadd.f32 %v285_v61, %v284_v0 }
  0x2c   :  { %v297_v28 = vsel %vm190_vm1, %v163_v20, 0.0 }
  0x2d   :  { %v229_v5 = vadd.f32 %v228_v59, %v227_v63  ;;  %v288_v12 = vadd.f32 %v287_v4, %v286_v6 }
  0x2f   :  { %v231_v11 = vadd.f32 %v230_v2, %v229_v5  ;;  %v290_v18 = vadd.f32 %v289_v10, %v288_v12 }
  0x31   :  { %v233_v17 = vadd.f32 %v232_v8, %v231_v11  ;;  %v292_v23 = vadd.f32 %v291_v16, %v290_v18 }
  0x33   :  { %v235_v22 = vadd.f32 %v234_v14, %v233_v17  ;;  %v294_v27 = vadd.f32 %v293_v21, %v292_v23 }
  0x35   :  { %v237_v26 = vadd.f32 %v236_v19, %v235_v22  ;;  %v296_v30 = vadd.f32 %v295_v25, %v294_v27 }
  0x37   :  { %v239_v29 = vadd.f32 %v238_v24, %v237_v26  ;;  %v298_v32 = vadd.f32 %v297_v28, %v296_v30 }
  0x39   :  { %v240_v31 = vrot.slane %v239_v29, 4  ;;  %v299_v34 = vrot.slane %v298_v32, 4 }
  0x3b   :  { %v241_v33 = vadd.f32 %v240_v31, %v239_v29  ;;  %v300_v36 = vadd.f32 %v299_v34, %v298_v32 }
  0x3d   :  { %v242_v35 = vrot.slane %v241_v33, 2  ;;  %v301_v38 = vrot.slane %v300_v36, 2 }
  0x3f   :  { %v243_v37 = vadd.f32 %v242_v35, %v241_v33  ;;  %v302_v40 = vadd.f32 %v301_v38, %v300_v36 }
  0x41   :  { %v244_v39 = vrot.slane %v243_v37, 1  ;;  %v303_v43 = vrot.slane %v302_v40, 1 }
  0x43   :  { %v245_v42 = vadd.f32 %v244_v39, %v243_v37  ;;  %v304_v46 = vadd.f32 %v303_v43, %v302_v40 }
  0x45   :  { %v246_v45 = vadd.f32 %v245_v42, %v164_v41  ;;  %v305_v47 = vadd.f32 %v304_v46, %v249_v44 }
  0x47   :  { %248 = vst.msk [vmem:[#allocation2] sm:$0x1] %vm61_vm0, %v246_v45 }
  0x48   :  { %306 = vst.msk [vmem:[#allocation3] sm:$0x1] %vm61_vm0, %v305_v47 }
  0x4e   :  { %v310_v48 = vld [vmem:[#allocation2] sm:$0x1] }
  0x4f   :  { %311 = vst.msk [vmem:[%s618_s2] sm:$0x1] %vm61_vm0, %v310_v48  ;;  %v312_v49 = vld [vmem:[#allocation3] sm:$0x1] }
  0x50   :  { %313 = vst.msk [vmem:[%s619_s3] sm:$0x1] %vm61_vm0, %v312_v49 }

</bundles_post_ra>
